<compile_context>
chip_gen: v6e
topology: v6e:2x2x1
jax: 0.10.0
libtpu: 0.0.40
codegen_flags: <defaults>
</compile_context>

<pallas_src>
import jax
import jax.numpy as jnp
from jax.experimental import pallas as pl
from jax.experimental.pallas import tpu as pltpu


def _decoder_kernel(idx_ref,        # (1,) int32 token id  [SMEM, scalar prefetch, unused in body]
                    emb_ref,        # (1, 1, H) selected embedding row (gathered via index_map)
                    h_ref,          # (1, H) previous hidden state
                    enc_ref,        # (L, H) encoder outputs
                    slab_ref,       # (H+1, W) packed [w_x|w_h|w_ca|w_ih|w_out ; biases row]
                    out_ref):       # (1, OUT_W) packed [logp | h_new | attn_w | pad]
    del idx_ref                     # gather already done by the BlockSpec index_map
    H = h_ref.shape[1]
    L = enc_ref.shape[0]
    W0 = L + H
    V = slab_ref.shape[1] - 2 * W0 - 2 * H

    # ---- embedding lookup result (dropout = identity, eval mode) ---------------
    x = emb_ref[0]                                  # (1, H)
    h = h_ref[...]                                  # (1, H)

    # ---- single aligned load of the packed weight/bias slab, static value slices
    slab = slab_ref[...]                            # (H+1, W)
    wmat = slab[:H]                                 # (H, W)   weights
    brow = slab[H:H + 1]                            # (1, W)   biases (zero-padded tail)

    w_x   = wmat[:, 0:W0]                           # [W_attn[:H] | W_comb[:H]]   (H, L+H)
    w_h   = wmat[:, W0:2 * W0]                      # [W_attn[H:] | W_hh]         (H, L+H)
    w_ca  = wmat[:, 2 * W0:2 * W0 + H]              # W_comb[H:]                  (H, H)
    w_ih  = wmat[:, 2 * W0 + H:2 * W0 + 2 * H]      # RNN input weights           (H, H)
    w_out = wmat[:, 2 * W0 + 2 * H:2 * W0 + 2 * H + V]                          # (H, V)

    b_attn = brow[:, 0:L]
    b_comb = brow[:, L:L + H]
    b_rnn  = brow[:, L + H:L + 2 * H]               # b_ih + b_hh (pre-folded)
    b_out  = brow[:, L + 2 * H:L + 2 * H + V]

    # ---- fused input / hidden projections (2 dots instead of 4) ----------------
    xz = jnp.dot(x, w_x, preferred_element_type=jnp.float32)     # (1, L+H)
    hz = jnp.dot(h, w_h, preferred_element_type=jnp.float32)     # (1, L+H)

    # ---- attention weights: softmax over max_length (exact divide) -------------
    attn_logits = xz[:, :L] + hz[:, :L] + b_attn                  # (1, L)
    m = jnp.max(attn_logits, axis=-1, keepdims=True)
    e = jnp.exp(attn_logits - m)
    attn_w = e / jnp.sum(e, axis=-1, keepdims=True)               # (1, L)

    # ---- apply attention over encoder outputs ----------------------------------
    attn_applied = jnp.dot(attn_w, enc_ref[...],
                           preferred_element_type=jnp.float32)    # (1, H)

    # ---- attn_combine + ReLU ----------------------------------------------------
    combined = (xz[:, L:]
                + jnp.dot(attn_applied, w_ca, preferred_element_type=jnp.float32)
                + b_comb)                                         # (1, H)
    rnn_in = jnp.maximum(combined, 0.0)

    # ---- single-step vanilla RNN (tanh) cell (matches nn.RNN) -------------------
    h_new = jnp.tanh(
        jnp.dot(rnn_in, w_ih, preferred_element_type=jnp.float32)
        + hz[:, L:] + b_rnn)                                      # (1, H)

    # ---- output projection + log_softmax ----------------------------------------
    logits = (jnp.dot(h_new, w_out, preferred_element_type=jnp.float32)
              + b_out)                                            # (1, V)
    lm = jnp.max(logits, axis=-1, keepdims=True)
    lse = jnp.log(jnp.sum(jnp.exp(logits - lm), axis=-1, keepdims=True))
    logp = logits - (lm + lse)

    # ---- single lane-dense packed store: [logp | h_new | attn_w | pad] ----------
    pad = out_ref.shape[1] - (V + H + L)
    parts = [logp, h_new, attn_w]
    if pad:
        parts.append(jnp.zeros((1, pad), jnp.float32))
    out_ref[...] = jnp.concatenate(parts, axis=1)


def pack_params(params):
    """One-time wrapper-side repack of PyTorch-layout weights into one fused slab."""
    V, H = params["embedding"].shape
    L = params["b_attn"].shape[1]
    w_x   = jnp.concatenate([params["w_attn"][:H], params["w_comb"][:H]], axis=1)   # (H, L+H)
    w_h   = jnp.concatenate([params["w_attn"][H:], params["w_hh"]], axis=1)         # (H, L+H)
    w_ca  = params["w_comb"][H:]                                                    # (H, H)
    w_ih  = params["w_ih"]                                                          # (H, H)
    w_out = params["w_out"]                                                         # (H, V)
    wmat = jnp.concatenate([w_x, w_h, w_ca, w_ih, w_out], axis=1)                   # (H, W)
    W = wmat.shape[1]
    b_all = jnp.concatenate(
        [params["b_attn"], params["b_comb"],
         params["b_ih"] + params["b_hh"], params["b_out"]], axis=1)                 # (1, L+2H+V)
    b_row = jnp.pad(b_all, ((0, 0), (0, W - b_all.shape[1])))
    slab = jnp.concatenate([wmat, b_row], axis=0)                                   # (H+1, W)
    # embedding reshaped so a (1, 1, H) block selects exactly one row
    emb = params["embedding"].reshape(V, 1, H)
    return {"emb": emb, "slab": slab}


def attn_decoder_forward(x_idx, hn, encoder_outputs, packed):
    """x_idx: int32 token id (scalar), hn: (1,1,H), encoder_outputs: (L,H)."""
    V, _, H = packed["emb"].shape
    L = encoder_outputs.shape[0]
    out_w = pl.cdiv(V + H + L, 128) * 128            # lane-dense packed output width

    # clamp the token id: OOB ids would otherwise silently gather a wrong row
    idx = jnp.clip(jnp.asarray(x_idx, jnp.int32).reshape((1,)), 0, V - 1)
    h0 = hn[0]                                        # (1, H)

    grid_spec = pltpu.PrefetchScalarGridSpec(
        num_scalar_prefetch=1,                        # idx lands in SMEM before the grid runs
        grid=(1,),
        in_specs=[
            # gather exactly one embedding row via the prefetched id
            pl.BlockSpec((1, 1, H), lambda i, idx_ref: (idx_ref[0], 0, 0)),
            pl.BlockSpec((1, H),    lambda i, idx_ref: (0, 0)),
            pl.BlockSpec((L, H),    lambda i, idx_ref: (0, 0)),
            pl.BlockSpec(packed["slab"].shape, lambda i, idx_ref: (0, 0)),
        ],
        out_specs=pl.BlockSpec((1, out_w), lambda i, idx_ref: (0, 0)),
    )

    packed_out = pl.pallas_call(
        _decoder_kernel,
        out_shape=jax.ShapeDtypeStruct((1, out_w), jnp.float32),
        grid_spec=grid_spec,
        compiler_params=pltpu.CompilerParams(dimension_semantics=("arbitrary",)),
    )(idx, packed["emb"], h0, encoder_outputs, packed["slab"])

    logp   = packed_out[:, :V]
    h_new  = packed_out[:, V:V + H]
    attn_w = packed_out[:, V + H:V + H + L]
    return logp, h_new.reshape(1, 1, H), attn_w


def reference_forward(x_idx, hn, encoder_outputs, params):
    """Pure-JAX reference of the PyTorch module's forward (eval mode)."""
    H = params["embedding"].shape[1]
    x = params["embedding"][x_idx].reshape(1, H)
    h = hn[0]
    attn_logits = jnp.concatenate([x, h], axis=1) @ params["w_attn"] + params["b_attn"]
    attn_w = jax.nn.softmax(attn_logits, axis=1)
    attn_applied = attn_w @ encoder_outputs
    combined = (jnp.concatenate([x, attn_applied], axis=1) @ params["w_comb"]
                + params["b_comb"])
    rnn_in = jax.nn.relu(combined)
    h_new = jnp.tanh(rnn_in @ params["w_ih"] + params["b_ih"]
                     + h @ params["w_hh"] + params["b_hh"])
    logp = jax.nn.log_softmax(h_new @ params["w_out"] + params["b_out"], axis=1)
    return logp, h_new.reshape(1, 1, H), attn_w


def init_params(key, hidden_size, output_size, max_length):
    ks = jax.random.split(key, 12)
    s = 0.1
    H, V, L = hidden_size, output_size, max_length
    # weights already transposed to (in_features, out_features)
    return {
        "embedding": jax.random.normal(ks[0], (V, H), jnp.float32) * s,
        "w_attn":    jax.random.normal(ks[1], (2 * H, L), jnp.float32) * s,
        "b_attn":    jax.random.normal(ks[2], (1, L), jnp.float32) * s,
        "w_comb":    jax.random.normal(ks[3], (2 * H, H), jnp.float32) * s,
        "b_comb":    jax.random.normal(ks[4], (1, H), jnp.float32) * s,
        "w_ih":      jax.random.normal(ks[5], (H, H), jnp.float32) * s,
        "b_ih":      jax.random.normal(ks[6], (1, H), jnp.float32) * s,
        "w_hh":      jax.random.normal(ks[7], (H, H), jnp.float32) * s,
        "b_hh":      jax.random.normal(ks[8], (1, H), jnp.float32) * s,
        "w_out":     jax.random.normal(ks[9], (H, V), jnp.float32) * s,
        "b_out":     jax.random.normal(ks[10], (1, V), jnp.float32) * s,
    }


if __name__ == "__main__":
    hidden_size, output_size, max_length = 32, 64, 16

    key = jax.random.PRNGKey(0)
    k_param, k_h, k_enc = jax.random.split(key, 3)
    params = init_params(k_param, hidden_size, output_size, max_length)
    packed = pack_params(params)

    x_idx = jnp.int32(5)                                              # input token id
    hn = jax.random.normal(k_h, (1, 1, hidden_size), jnp.float32)     # (1,1,H)
    encoder_outputs = jax.random.normal(
        k_enc, (max_length, hidden_size), jnp.float32)                # (L,H)

    logp, hn_new, attn_w = attn_decoder_forward(x_idx, hn, encoder_outputs, packed)
    jax.block_until_ready((logp, hn_new, attn_w))

    assert logp.shape == (1, output_size)
    assert hn_new.shape == (1, 1, hidden_size)
    assert attn_w.shape == (1, max_length)

    # pure-JAX reference check (f32 end-to-end, exact softmax divide -> tight tol)
    ref_logp, ref_hn, ref_attn = reference_forward(x_idx, hn, encoder_outputs, params)
    assert jnp.allclose(logp, ref_logp, atol=1e-4, rtol=1e-4)
    assert jnp.allclose(hn_new, ref_hn, atol=1e-4, rtol=1e-4)
    assert jnp.allclose(attn_w, ref_attn, atol=1e-4, rtol=1e-4)

    print("KERNEL_OK")
</pallas_src>

<mosaic_0001>
module attributes {stable_mosaic.version = 11 : i64} {
  func.func @_decoder_kernel(%arg0: i32, %arg1: memref<1xi32, #tpu.memory_space<smem>>, %arg2: memref<1x1x32xf32, #tpu.memory_space<vmem>>, %arg3: memref<1x32xf32, #tpu.memory_space<vmem>>, %arg4: memref<16x32xf32, #tpu.memory_space<vmem>>, %arg5: memref<33x224xf32, #tpu.memory_space<vmem>>, %arg6: memref<1x128xf32, #tpu.memory_space<vmem>>) attributes {dimension_semantics = [#tpu.dimension_semantics<arbitrary>], iteration_bounds = array<i64: 1>, scalar_prefetch = 1 : i64, scratch_operands = 0 : i64, tpu.core_type = #tpu.core_type<tc>, window_params = [{transform_indices = @transform_0, window_bounds = array<i64: 1, 1, 32>}, {pipeline_mode = #tpu.pipeline_mode<synchronous>, transform_indices = @transform_1, window_bounds = array<i64: 1, 32>}, {pipeline_mode = #tpu.pipeline_mode<synchronous>, transform_indices = @transform_2, window_bounds = array<i64: 16, 32>}, {pipeline_mode = #tpu.pipeline_mode<synchronous>, transform_indices = @transform_3, window_bounds = array<i64: 33, 224>}, {pipeline_mode = #tpu.pipeline_mode<synchronous>, transform_indices = @transform_4, window_bounds = array<i64: 1, 128>}]} {
    %c0 = arith.constant 0 : index
    %c0_0 = arith.constant 0 : index
    %c0_1 = arith.constant 0 : index
    %0 = vector.load %arg2[%c0, %c0_0, %c0_1] : memref<1x1x32xf32, #tpu.memory_space<vmem>>, vector<1x1x32xf32>
    %1 = vector.shape_cast %0 : vector<1x1x32xf32> to vector<1x32xf32>
    %c0_2 = arith.constant 0 : index
    %c0_3 = arith.constant 0 : index
    %2 = vector.load %arg3[%c0_2, %c0_3] : memref<1x32xf32, #tpu.memory_space<vmem>>, vector<1x32xf32>
    %c0_4 = arith.constant 0 : index
    %c0_5 = arith.constant 0 : index
    %3 = vector.load %arg5[%c0_4, %c0_5] : memref<33x224xf32, #tpu.memory_space<vmem>>, vector<33x224xf32>
    %4 = vector.extract_strided_slice %3 {offsets = [0, 0], sizes = [32, 224], strides = [1, 1]} : vector<33x224xf32> to vector<32x224xf32>
    %5 = vector.extract_strided_slice %3 {offsets = [32, 0], sizes = [1, 224], strides = [1, 1]} : vector<33x224xf32> to vector<1x224xf32>
    %6 = vector.extract_strided_slice %4 {offsets = [0, 0], sizes = [32, 48], strides = [1, 1]} : vector<32x224xf32> to vector<32x48xf32>
    %7 = vector.extract_strided_slice %4 {offsets = [0, 48], sizes = [32, 48], strides = [1, 1]} : vector<32x224xf32> to vector<32x48xf32>
    %8 = vector.extract_strided_slice %4 {offsets = [0, 96], sizes = [32, 32], strides = [1, 1]} : vector<32x224xf32> to vector<32x32xf32>
    %9 = vector.extract_strided_slice %4 {offsets = [0, 128], sizes = [32, 32], strides = [1, 1]} : vector<32x224xf32> to vector<32x32xf32>
    %10 = vector.extract_strided_slice %4 {offsets = [0, 160], sizes = [32, 64], strides = [1, 1]} : vector<32x224xf32> to vector<32x64xf32>
    %11 = vector.extract_strided_slice %5 {offsets = [0, 0], sizes = [1, 16], strides = [1, 1]} : vector<1x224xf32> to vector<1x16xf32>
    %12 = vector.extract_strided_slice %5 {offsets = [0, 16], sizes = [1, 32], strides = [1, 1]} : vector<1x224xf32> to vector<1x32xf32>
    %13 = vector.extract_strided_slice %5 {offsets = [0, 48], sizes = [1, 32], strides = [1, 1]} : vector<1x224xf32> to vector<1x32xf32>
    %14 = vector.extract_strided_slice %5 {offsets = [0, 80], sizes = [1, 64], strides = [1, 1]} : vector<1x224xf32> to vector<1x64xf32>
    %cst = arith.constant dense<0.000000e+00> : vector<1x48xf32>
    %15 = tpu.matmul %1, %6, %cst {dimension_numbers = #tpu.dot_dimension_numbers<[1], [0], [0], [1], [0, 0, 1, 1], [], []>} : vector<1x32xf32>, vector<32x48xf32>, vector<1x48xf32> -> vector<1x48xf32>
    %cst_6 = arith.constant dense<0.000000e+00> : vector<1x48xf32>
    %16 = tpu.matmul %2, %7, %cst_6 {dimension_numbers = #tpu.dot_dimension_numbers<[1], [0], [0], [1], [0, 0, 1, 1], [], []>} : vector<1x32xf32>, vector<32x48xf32>, vector<1x48xf32> -> vector<1x48xf32>
    %17 = vector.extract_strided_slice %15 {offsets = [0, 0], sizes = [1, 16], strides = [1, 1]} : vector<1x48xf32> to vector<1x16xf32>
    %18 = vector.extract_strided_slice %16 {offsets = [0, 0], sizes = [1, 16], strides = [1, 1]} : vector<1x48xf32> to vector<1x16xf32>
    %19 = arith.addf %17, %18 : vector<1x16xf32>
    %20 = arith.addf %19, %11 : vector<1x16xf32>
    %cst_7 = arith.constant dense<0xFF800000> : vector<1xf32>
    %21 = vector.multi_reduction <maximumf>, %20, %cst_7 [1] : vector<1x16xf32> to vector<1xf32>
    %22 = vector.shape_cast %21 : vector<1xf32> to vector<1x1xf32>
    %23 = vector.broadcast %22 : vector<1x1xf32> to vector<1x16xf32>
    %24 = arith.subf %20, %23 : vector<1x16xf32>
    %25 = math.exp %24 : vector<1x16xf32>
    %cst_8 = arith.constant dense<0.000000e+00> : vector<1xf32>
    %26 = vector.multi_reduction <add>, %25, %cst_8 [1] : vector<1x16xf32> to vector<1xf32>
    %27 = vector.shape_cast %26 : vector<1xf32> to vector<1x1xf32>
    %28 = vector.broadcast %27 : vector<1x1xf32> to vector<1x16xf32>
    %29 = arith.divf %25, %28 : vector<1x16xf32>
    %c0_9 = arith.constant 0 : index
    %c0_10 = arith.constant 0 : index
    %30 = vector.load %arg4[%c0_9, %c0_10] : memref<16x32xf32, #tpu.memory_space<vmem>>, vector<16x32xf32>
    %cst_11 = arith.constant dense<0.000000e+00> : vector<1x32xf32>
    %31 = tpu.matmul %29, %30, %cst_11 {dimension_numbers = #tpu.dot_dimension_numbers<[1], [0], [0], [1], [0, 0, 1, 1], [], []>} : vector<1x16xf32>, vector<16x32xf32>, vector<1x32xf32> -> vector<1x32xf32>
    %32 = vector.extract_strided_slice %15 {offsets = [0, 16], sizes = [1, 32], strides = [1, 1]} : vector<1x48xf32> to vector<1x32xf32>
    %cst_12 = arith.constant dense<0.000000e+00> : vector<1x32xf32>
    %33 = tpu.matmul %31, %8, %cst_12 {dimension_numbers = #tpu.dot_dimension_numbers<[1], [0], [0], [1], [0, 0, 1, 1], [], []>} : vector<1x32xf32>, vector<32x32xf32>, vector<1x32xf32> -> vector<1x32xf32>
    %34 = arith.addf %32, %33 : vector<1x32xf32>
    %35 = arith.addf %34, %12 : vector<1x32xf32>
    %cst_13 = arith.constant 0.000000e+00 : f32
    %36 = vector.broadcast %cst_13 : f32 to vector<1x32xf32>
    %37 = arith.maximumf %35, %36 : vector<1x32xf32>
    %cst_14 = arith.constant dense<0.000000e+00> : vector<1x32xf32>
    %38 = tpu.matmul %37, %9, %cst_14 {dimension_numbers = #tpu.dot_dimension_numbers<[1], [0], [0], [1], [0, 0, 1, 1], [], []>} : vector<1x32xf32>, vector<32x32xf32>, vector<1x32xf32> -> vector<1x32xf32>
    %39 = vector.extract_strided_slice %16 {offsets = [0, 16], sizes = [1, 32], strides = [1, 1]} : vector<1x48xf32> to vector<1x32xf32>
    %40 = arith.addf %38, %39 : vector<1x32xf32>
    %41 = arith.addf %40, %13 : vector<1x32xf32>
    %42 = math.tanh %41 : vector<1x32xf32>
    %cst_15 = arith.constant dense<0.000000e+00> : vector<1x64xf32>
    %43 = tpu.matmul %42, %10, %cst_15 {dimension_numbers = #tpu.dot_dimension_numbers<[1], [0], [0], [1], [0, 0, 1, 1], [], []>} : vector<1x32xf32>, vector<32x64xf32>, vector<1x64xf32> -> vector<1x64xf32>
    %44 = arith.addf %43, %14 : vector<1x64xf32>
    %cst_16 = arith.constant dense<0xFF800000> : vector<1xf32>
    %45 = vector.multi_reduction <maximumf>, %44, %cst_16 [1] : vector<1x64xf32> to vector<1xf32>
    %46 = vector.shape_cast %45 : vector<1xf32> to vector<1x1xf32>
    %47 = vector.broadcast %46 : vector<1x1xf32> to vector<1x64xf32>
    %48 = arith.subf %44, %47 : vector<1x64xf32>
    %49 = math.exp %48 : vector<1x64xf32>
    %cst_17 = arith.constant dense<0.000000e+00> : vector<1xf32>
    %50 = vector.multi_reduction <add>, %49, %cst_17 [1] : vector<1x64xf32> to vector<1xf32>
    %51 = vector.shape_cast %50 : vector<1xf32> to vector<1x1xf32>
    %52 = math.log %51 : vector<1x1xf32>
    %53 = arith.addf %46, %52 : vector<1x1xf32>
    %54 = vector.broadcast %53 : vector<1x1xf32> to vector<1x64xf32>
    %55 = arith.subf %44, %54 : vector<1x64xf32>
    %cst_18 = arith.constant 0.000000e+00 : f32
    %56 = vector.broadcast %cst_18 : f32 to vector<1x16xf32>
    %57 = tpu.concatenate %55, %42, %29, %56 in 1 : vector<1x64xf32>, vector<1x32xf32>, vector<1x16xf32>, vector<1x16xf32> -> vector<1x128xf32>
    %c0_19 = arith.constant 0 : index
    %c0_20 = arith.constant 0 : index
    %58 = vector.load %arg6[%c0_19, %c0_20] : memref<1x128xf32, #tpu.memory_space<vmem>>, vector<1x128xf32>
    tpu.vector_store %arg6[%c0_19, %c0_20], %57 {strides = array<i32>} : memref<1x128xf32, #tpu.memory_space<vmem>>, vector<1x128xf32>,
    return
  }
  func.func @transform_0(%arg0: i32, %arg1: memref<1xi32, #tpu.memory_space<smem>>) -> (i32, i32, i32) {
    %c0 = arith.constant 0 : index
    %0 = memref.load %arg1[%c0] : memref<1xi32, #tpu.memory_space<smem>>
    %c0_i32 = arith.constant 0 : i32
    %c0_i32_0 = arith.constant 0 : i32
    %c0_i32_1 = arith.constant 0 : i32
    return %0, %c0_i32, %c0_i32_0 : i32, i32, i32
  }
  func.func @transform_1(%arg0: i32, %arg1: memref<1xi32, #tpu.memory_space<smem>>) -> (i32, i32) {
    %c0_i32 = arith.constant 0 : i32
    %c0_i32_0 = arith.constant 0 : i32
    %c0_i32_1 = arith.constant 0 : i32
    return %c0_i32, %c0_i32_0 : i32, i32
  }
  func.func @transform_2(%arg0: i32, %arg1: memref<1xi32, #tpu.memory_space<smem>>) -> (i32, i32) {
    %c0_i32 = arith.constant 0 : i32
    %c0_i32_0 = arith.constant 0 : i32
    %c0_i32_1 = arith.constant 0 : i32
    return %c0_i32, %c0_i32_0 : i32, i32
  }
  func.func @transform_3(%arg0: i32, %arg1: memref<1xi32, #tpu.memory_space<smem>>) -> (i32, i32) {
    %c0_i32 = arith.constant 0 : i32
    %c0_i32_0 = arith.constant 0 : i32
    %c0_i32_1 = arith.constant 0 : i32
    return %c0_i32, %c0_i32_0 : i32, i32
  }
  func.func @transform_4(%arg0: i32, %arg1: memref<1xi32, #tpu.memory_space<smem>>) -> (i32, i32) {
    %c0_i32 = arith.constant 0 : i32
    %c0_i32_0 = arith.constant 0 : i32
    %c0_i32_1 = arith.constant 0 : i32
    return %c0_i32, %c0_i32_0 : i32, i32
  }
}

</mosaic_0001>

<bundles_post_ra>
// kernel: tpu_custom_call.1
= control target key start
LH: loop header
LB: loop body
LE: loop exit
PB: predicated region body
PF: predicated region fallthrough
CT: control target
= control target key end

     0   :  { %s755_s22 = smov 80   ;;  %v756_v4 = vmov 0.0   ;;  %s933_s0 = inlined_call_operand.<no memory space> [shape: s32[1], index: 0, kind: input, shape index: {}]   ;;  %s934_s1 = inlined_call_operand.vmem [shape: f32[64,1,32], index: 1, kind: input, shape index: {}]   ;;  %s935_s2 = inlined_call_operand.vmem [shape: f32[1,32], index: 2, kind: input, shape index: {}]   ;;  %s936_s3 = inlined_call_operand.vmem [shape: f32[16,32], index: 3, kind: input, shape index: {}]   ;;  %s937_s4 = inlined_call_operand.vmem [shape: f32[33,224], index: 4, kind: input, shape index: {}]   ;;  %s938_s5 = inlined_call_operand.hbm [shape: f32[1,128], index: 5, kind: output, shape index: {}]  }
   0x1   :  { %v798_v0 = vld [vmem:[%s937_s4 + $0x30] sm:$0xff]  ;;  %p30_p0 = scmp.lt.s32.totalorder %s933_s0, 63  ;;  %v815_v2 = vld [vmem:[%s937_s4 + $0x20] sm:$0xff]  ;;  %651 = vmatprep.subr.mxu0 %v756_v4  ;;  %662 = vmatprep.subr.mxu1 %v756_v4 }
   0x2   :  { %v803_v1 = vld [vmem:[%s937_s4 + $0x10] sm:$0xff]  ;;  %130 = vrot.lane.b32.xlu0 %v798_v0, %s755_s22  ;;  %v820_v3 = vld [vmem:[%s937_s4] sm:$0xff] }
   0x3   :  { %126 = vrot.lane.b32.xlu1 %v803_v1, %s755_s22 }
   0x4   :  { %11 = vsyncpa [#allocation5], 0  ;;  %652 = vmatpush3.msra.mxu0 %v798_v0  ;;  %vm757_vm0 = vmmov 0   ;;  %s940_s0 = smov (!%p30_p0, %s933_s0), 63  ;;  %vm46_vm1 = vcmask 261120   ;;  %vm211_vm2 = vcmask 122880  }
   0x5   :  { %659 = vmatprep.mubr.msk.f32.mxu0 %vm757_vm0, %v756_v4  ;;  %653 = vmatprep.subr.mxu0 %v756_v4  ;;  %s32_s8 = scalar_lea.vmem %s934_s1, %s940_s0  ;;  %v35_v10 = vld [vmem:[%s935_s2] sm:$0x1]  ;;  %v224_v24 = vld [vmem:[%s936_s3 + $0x8] sm:$0xff]  ;;  %s758_s14 = smov 32   ;;  %vm225_vm3 = vcmask 130048   ;;  %v43_v35 = vld [vmem:[%s937_s4 + $0x38] sm:$0xff] }
   0x6   :  { %670 = vmatprep.mubr.msk.f32.mxu1 %vm757_vm0, %v756_v4  ;;  %128 = vrot.lane.b32.xlu0 %v815_v2, %s755_s22  ;;  %v34_v5 = vld [vmem:[%s32_s8] sm:$0x1]  ;;  %v41_v36 = vld [vmem:[%s937_s4 + $0x28] sm:$0xff]  ;;  %v39_v37 = vld [vmem:[%s937_s4 + $0x18] sm:$0xff]  ;;  %s759_s23 = smov 16   ;;  %s760_s24 = smov 112  }
   0x7   :  { %124 = vrot.lane.b32.xlu1 %v820_v3, %s755_s22  ;;  %654 = vmatpush3.msra.mxu0 %v815_v2  ;;  %v866_v14 = vld [vmem:[%s937_s4 + $0x40] sm:$0x1]  ;;  %v37_v38 = vld [vmem:[%s937_s4 + $0x8] sm:$0xff]  ;;  %s761_s25 = smov 96   ;;  %s762_s27 = smov 48   ;;  %vm497_vm4 = vcmask 392192  }
   0x8   :  { %655 = vmatprep.subr.mxu0 %v756_v4  ;;  %v223_v25 = vld [vmem:[%s936_s3] sm:$0xff]  ;;  %v45_v52 = vld [vmem:[%s937_s4 + $0x48] sm:$0x1]  ;;  %vm573_vm5 = vcmask 516096   ;;  %s763_s4 = smov 64   ;;  %vm593_vm6 = vcmask 523264  }
   0x9   :  { %656 = vmatpush3.msra.mxu0 %v803_v1  ;;  %vm595_vm7 = vcmask 785408   ;;  %s764_s28 = smov [#allocation4]   ;;  %vm597_vm8 = vcmask 916480  }
   0xa   :  { %657 = vmatprep.subr.mxu0 %v756_v4  ;;  %s606_s29 = sshll.u32 %s764_s28, 4  ;;  %s607_s29 = int_to_ptr.vmem [resolvable:$true] %s606_s29 }
   0xb   :  { %658 = vmatpush3.msra.mxu0 %v820_v3  ;;  %s733_s30 = scalar_lea.vmem %s607_s29, 16  ;;  %s737_s6 = scalar_lea.vmem %s607_s29, 32 }
   0xc   :  { %660 = vmatmul.mubr.msk.f32.vlgmr.msra.gmra.mxu0 %vm46_vm1, %v34_v5  ;;  %673 = vmatprep.subr.mxu0 %v756_v4  ;;  %p734_p1 = scmp.ne.s32.totalorder %s607_s29, %s733_s30  ;;  %p738_p2 = scmp.lt.s32.totalorder %s607_s29, %s607_s29 }
   0xd   :  { %677 = vmatprep.mubr.msk.f32.mxu0 %vm757_vm0, %v756_v4  ;;  %674 = vmatpush3.msra.mxu0 %v224_v24  ;;  %p739_p3 = scmp.lt.s32.totalorder %s737_s6, %s733_s30 }
   0xe   :  { %675 = vmatprep.subr.mxu0 %v756_v4 }
   0xf   :  { %676 = vmatpush3.msra.mxu0 %v223_v25  ;;  %p740_p4 = por %p739_p3, %p738_p2 }
  0x10   :  { %691 = vmatprep.subr.mxu0 %v756_v4 }
  0x11   :  { %p741_p5 = pnand %p740_p4, %p734_p1 }
  0x74   :  { %v131_v6 = vpop.permute.xlu0 %130 }
  0x75   :  { %v127_v7 = vpop.permute.xlu1 %126  ;;  %663 = vmatpush3.msra.mxu1 %v131_v6 }
  0x76   :  { %664 = vmatprep.subr.mxu1 %v756_v4 }
  0x78   :  { %v129_v8 = vpop.permute.xlu0 %128 }
  0x79   :  { %665 = vmatpush3.msra.mxu1 %v129_v8  ;;  %v125_v9 = vpop.permute.xlu1 %124 }
  0x7a   :  { %666 = vmatprep.subr.mxu1 %v756_v4 }
  0x7b   :  { %667 = vmatpush3.msra.mxu1 %v127_v7 }
  0x7c   :  { %668 = vmatprep.subr.mxu1 %v756_v4 }
  0x7d   :  { %669 = vmatpush3.msra.mxu1 %v125_v9 }
  0x7e   :  { %671 = vmatmul.mubr.msk.f32.vlgmr.msra.gmra.mxu1 %vm46_vm1, %v35_v10  ;;  %680 = vmatprep.subr.mxu1 %v756_v4 }
  0x7f   :  { %688 = vmatprep.mubr.msk.f32.mxu1 %vm757_vm0, %v756_v4 }
  0xcc   :  { %v859_v11 = vpop.f32.mrf.mxu0 }
  0xce   :  { %v661_v12 = vpop.f32.mrf.mxu0 }
 0x13e   :  { %v861_v13 = vpop.f32.mrf.mxu1 }
 0x13f   :  { %v209_v15 = vadd.f32 %v861_v13, %v859_v11 }
 0x140   :  { %v672_v16 = vpop.f32.mrf.mxu1 }
 0x141   :  { %v210_v17 = vadd.f32 %v209_v15, %v866_v14 }
 0x143   :  { %v212_v18 = vsel %vm211_vm2, %v210_v17, -inf }
 0x144   :  { %213 = vmax.xlane.f32.xlu0 %v212_v18 }
 0x15a   :  { %305 = vrot.lane.b32.xlu0 %v798_v0, %s758_s14 }
 0x15e   :  { %301 = vrot.lane.b32.xlu0 %v803_v1, %s758_s14 }
 0x1cd   :  { %v214_v19 = vpop.xlane.xlu0 %213 }
 0x1ce   :  { %v215_v20 = vsub.f32 %v210_v17, %v214_v19 }
 0x1d0   :  { %v216_v21 = vmul.f32 1.442695, %v215_v20 }
 0x1d1   :  { %v306_v27 = vpop.permute.xlu0 %305 }
 0x1d2   :  { %723 = vpow2.f32 %v216_v21  ;;  %681 = vmatpush3.msra.mxu1 %v306_v27 }
 0x1d3   :  { %682 = vmatprep.subr.mxu1 %v756_v4 }
 0x1d5   :  { %v302_v29 = vpop.permute.xlu0 %301 }
 0x1df   :  { %v724_v22 = vpop.eup %723 }
 0x1e0   :  { %v218_v23 = vsel %vm211_vm2, %v724_v22, 0.0 }
 0x1e1   :  { %219 = vadd.xlane.f32.xlu1 %v218_v23 }
 0x1f2   :  { %303 = vrot.lane.b32.xlu1 %v815_v2, %s758_s14 }
 0x1f6   :  { %299 = vrot.lane.b32.xlu1 %v820_v3, %s758_s14 }
 0x26a   :  { %v220_v26 = vpop.xlane.xlu1 %219 }
 0x26b   :  { %725 = vrcp.f32 %v220_v26 }
 0x26e   :  { %v304_v28 = vpop.permute.xlu1 %303 }
 0x26f   :  { %683 = vmatpush3.msra.mxu1 %v304_v28 }
 0x270   :  { %684 = vmatprep.subr.mxu1 %v756_v4 }
 0x271   :  { %685 = vmatpush3.msra.mxu1 %v302_v29 }
 0x272   :  { %v300_v30 = vpop.permute.xlu1 %299  ;;  %686 = vmatprep.subr.mxu1 %v756_v4 }
 0x273   :  { %687 = vmatpush3.msra.mxu1 %v300_v30 }
 0x274   :  { %702 = vmatprep.subr.mxu1 %v756_v4 }
 0x278   :  { %v726_v31 = vpop.eup %725 }
 0x279   :  { %v887_v32 = vmul.f32 %v726_v31, %v724_v22 }
 0x27b   :  { %678 = vmatmul.mubr.msk.f32.vlgmr.msra.gmra.mxu0 %vm225_vm3, %v887_v32 }
 0x27c   :  { %699 = vmatprep.mubr.msk.f32.mxu0 %vm757_vm0, %v756_v4  ;;  %692 = vmatpush3.msra.mxu0 %v43_v35 }
 0x27d   :  { %693 = vmatprep.subr.mxu0 %v756_v4 }
 0x27e   :  { %694 = vmatpush3.msra.mxu0 %v41_v36 }
 0x27f   :  { %695 = vmatprep.subr.mxu0 %v756_v4 }
 0x280   :  { %696 = vmatpush3.msra.mxu0 %v39_v37 }
 0x281   :  { %697 = vmatprep.subr.mxu0 %v756_v4 }
 0x282   :  { %698 = vmatpush3.msra.mxu0 %v37_v38 }
 0x33b   :  { %v295_v33 = vpop.f32.mrf.mxu0 }
 0x33c   :  { %689 = vmatmul.mubr.msk.f32.vlgmr.msra.gmra.mxu1 %vm46_vm1, %v295_v33 }
 0x33d   :  { %v679_v34 = vpop.f32.mrf.mxu0  ;;  %710 = vmatprep.mubr.msk.f32.mxu1 %vm757_vm0, %v756_v4 }
 0x3fc   :  { %v380_v39 = vpop.f32.mrf.mxu1 }
 0x3fd   :  { %385 = vrot.lane.b32.xlu0 %v380_v39, %s759_s23 }
 0x3fe   :  { %v690_v40 = vpop.f32.mrf.mxu1 }
 0x401   :  { %395 = vrot.lane.b32.xlu0 %v861_v13, %s760_s24 }
 0x405   :  { %486 = vrot.lane.b32.xlu0 %v43_v35, %s761_s25 }
 0x409   :  { %482 = vrot.lane.b32.xlu0 %v39_v37, %s761_s25 }
 0x40d   :  { %493 = vrot.lane.b32.xlu0 %v866_v14, %s762_s27 }
 0x46f   :  { %v386_v41 = vpop.permute.xlu0 %385 }
 0x470   :  { %v388_v42 = vadd.f32 %v386_v41, %v859_v11 }
 0x472   :  { %v389_v43 = vadd.f32 %v388_v42, %v866_v14 }
 0x473   :  { %v396_v46 = vpop.permute.xlu0 %395 }
 0x474   :  { %v390_v44 = vmax.f32 %v389_v43, 0.0 }
 0x476   :  { %392 = vrot.lane.b32.xlu1 %v390_v44, %s760_s24 }
 0x477   :  { %v487_v48 = vpop.permute.xlu0 %486 }
 0x478   :  { %703 = vmatpush3.msra.mxu1 %v487_v48 }
 0x479   :  { %704 = vmatprep.subr.mxu1 %v756_v4 }
 0x47a   :  { %471 = vrot.lane.b32.xlu1 %v866_v14, %s755_s22 }
 0x47b   :  { %v483_v50 = vpop.permute.xlu0 %482 }
 0x47e   :  { %484 = vrot.lane.b32.xlu1 %v41_v36, %s761_s25 }
 0x47f   :  { %v494_v59 = vpop.permute.xlu0 %493 }
 0x482   :  { %480 = vrot.lane.b32.xlu1 %v37_v38, %s761_s25 }
 0x486   :  { %495 = vrot.lane.b32.xlu1 %v45_v52, %s762_s27 }
 0x4e8   :  { %v393_v45 = vpop.permute.xlu1 %392 }
 0x4e9   :  { %700 = vmatmul.mubr.msk.f32.vlgmr.msra.gmra.mxu0 %vm46_vm1, %v393_v45 }
 0x4ec   :  { %v472_v47 = vpop.permute.xlu1 %471 }
 0x4f0   :  { %v485_v49 = vpop.permute.xlu1 %484 }
 0x4f1   :  { %705 = vmatpush3.msra.mxu1 %v485_v49 }
 0x4f2   :  { %706 = vmatprep.subr.mxu1 %v756_v4 }
 0x4f3   :  { %707 = vmatpush3.msra.mxu1 %v483_v50 }
 0x4f4   :  { %v481_v51 = vpop.permute.xlu1 %480  ;;  %708 = vmatprep.subr.mxu1 %v756_v4 }
 0x4f5   :  { %709 = vmatpush3.msra.mxu1 %v481_v51 }
 0x4f8   :  { %v496_v58 = vpop.permute.xlu1 %495 }
 0x4f9   :  { %v498_v60 = vsel %vm497_vm4, %v494_v59, %v496_v58 }
 0x5a9   :  { %v466_v53 = vpop.f32.mrf.mxu0 }
 0x5aa   :  { %v467_v54 = vadd.f32 %v466_v53, %v396_v46 }
 0x5ab   :  { %v701_v55 = vpop.f32.mrf.mxu0 }
 0x5ac   :  { %v474_v56 = vadd.f32 %v472_v47, %v467_v54 }
 0x5ae   :  { %727 = vtanh.f32 %v474_v56 }
 0x5bb   :  { %v728_v57 = vpop.eup %727 }
 0x5bc   :  { %711 = vmatmul.mubr.msk.f32.vlgmr.msra.gmra.mxu1 %vm46_vm1, %v728_v57 }
 0x67c   :  { %v569_v61 = vpop.f32.mrf.mxu1 }
 0x67d   :  { %v570_v62 = vadd.f32 %v569_v61, %v498_v60 }
 0x67e   :  { %v712_v63 = vpop.f32.mrf.mxu1 }
 0x67f   :  { %v574_v0 = vsel %vm573_vm5, %v570_v62, -inf }
 0x680   :  { %575 = vmax.xlane.f32.xlu0 %v574_v0 }
 0x696   :  { %587 = vrot.lane.b32.xlu0 %v728_v57, %s763_s4 }
 0x709   :  { %v576_v1 = vpop.xlane.xlu0 %575 }
 0x70a   :  { %v577_v2 = vsub.f32 %v570_v62, %v576_v1 }
 0x70c   :  { %v578_v3 = vmul.f32 1.442695, %v577_v2 }
 0x70d   :  { %v588_v11 = vpop.permute.xlu0 %587 }
 0x70e   :  { %729 = vpow2.f32 %v578_v3 }
 0x71b   :  { %v730_v4 = vpop.eup %729 }
 0x71c   :  { %v580_v5 = vsel %vm573_vm5, %v730_v4, 0.0 }
 0x71d   :  { %581 = vadd.xlane.f32.xlu1 %v580_v5 }
 0x72e   :  { %590 = vrot.lane.b32.xlu1 %v887_v32, %s761_s25 }
 0x7a6   :  { %v582_v6 = vpop.xlane.xlu1 %581 }
 0x7a7   :  { %731 = vlog2.f32 %v582_v6 }
 0x7aa   :  { %v591_v12 = vpop.permute.xlu1 %590 }
 0x7b4   :  { %v732_v7 = vpop.eup %731 }
 0x7b5   :  { %v584_v8 = vmul.f32 0.6931472, %v732_v7 }
 0x7b7   :  { %v585_v9 = vadd.f32 %v584_v8, %v576_v1 }
 0x7b9   :  { %v586_v10 = vsub.f32 %v570_v62, %v585_v9 }
 0x7bb   :  { %v594_v13 = vsel %vm593_vm6, %v586_v10, %v588_v11 }
 0x7bc   :  { %v596_v14 = vsel %vm595_vm7, %v594_v13, %v591_v12 }
 0x7bd   :  { %v598_v15 = vsel %vm597_vm8, %v596_v14, 0.0 }
 0x7be   :  { %599 = vst [vmem:[#allocation4] sm:$0x1] %v598_v15 }
 0x7bf   :  { %744 = shalt.err (!%p741_p5)
}
 0x7c0   :  { %609 = dma.vmem_to_hbm [thread:$0]  %s607_s29, 16, %s938_s5, [#allocation5]  }
 0x7c1   :  { %753 = dma.done.wait [#allocation5], 16  }
 0x7c2   :  { %754 = vsyncadd [#allocation5], 4294967280 }
 0x7c3   :  { %613 = vsyncpa [#allocation5], 1 }

</bundles_post_ra>
